<compile_context>
chip_gen: v7x
topology: tpu7x:2x2x1
jax: 0.10.0
libtpu: 0.0.40
codegen_flags: <defaults>
</compile_context>

<pallas_src>
import functools
import numpy as np

import jax
import jax.numpy as jnp
from jax.experimental import pallas as pl
from jax.experimental.pallas import tpu as pltpu


def _vmem_block_budget_bytes():
    """Byte budget for one x (== one out) block; both are double-buffered."""
    cap = 0
    try:
        if jax.devices()[0].platform == "tpu":
            cap = int(getattr(pltpu.get_tpu_info(), "vmem_capacity_bytes", 0))
    except Exception:
        cap = 0
    if cap <= 0:
        cap = 64 * 1024 * 1024          # conservative default (v7x per-TC VMEM)
    # live VMEM ~= 2 arrays * 2 buffers * budget; keep it <= cap/4.
    return int(min(8 * 1024 * 1024, max(1 * 1024 * 1024, cap // 16)))


def _drop_path_kernel(x_ref, scale_ref, o_ref):
    # scale_ref is (tb, 1, ..., 1) in x's dtype; broadcasts over every
    # non-batch dim of the block (per-sample stochastic depth).
    o_ref[...] = x_ref[...] * scale_ref[...]


def pallas_drop_path(x, drop_prob=0.0, *, training=False, seed=0):
    """Per-sample stochastic depth; matches torch `drop_path` semantics."""
    if drop_prob == 0.0 or not training:
        return x                                        # identity fast path
    assert 0.0 < drop_prob < 1.0
    keep_prob = 1.0 - float(drop_prob)

    shape = tuple(int(d) for d in x.shape)
    ndim = len(shape)
    B = shape[0]
    itemsize = jnp.dtype(x.dtype).itemsize

    # Per-sample scale, computed once (hoisted out of the grid loop):
    #   mask_b = floor(keep_prob + U[0,1)) in {0,1}; scale_b = mask_b / keep_prob
    u = jax.random.uniform(jax.random.PRNGKey(seed), (B,), dtype=jnp.float32)
    scale = (jnp.floor(keep_prob + u) * (1.0 / keep_prob)).astype(x.dtype)
    scale = scale.reshape((B,) + (1,) * (ndim - 1))

    total = int(np.prod(shape))
    cost = pl.CostEstimate(flops=total, transcendentals=0,
                           bytes_accessed=2 * total * itemsize + B * itemsize)
    budget = _vmem_block_budget_bytes()

    if ndim == 1:
        # Degenerate case: every element is its own "sample".
        grid = (1,)
        x_spec = pl.BlockSpec((B,), lambda i: (0,))
        s_spec = pl.BlockSpec((B,), lambda i: (0,))
        dims = ("parallel",)
    else:
        if ndim == 2:
            F = shape[1]
            lane_q = F if F <= 128 else 128     # minimal lane-aligned tile unit
            unit_bytes = lane_q * itemsize
            n_units = pl.cdiv(F, lane_q)
        else:
            tail = int(np.prod(shape[2:]))      # last two dims stay whole (lane-dense
            unit_bytes = tail * itemsize        # w.r.t. the array's own layout)
            n_units = shape[1]                  # tile along dim 1

        # Keep the whole batch in every block when it fits (one scale block
        # covers all tiles); otherwise tile the batch as well.
        if B * unit_bytes <= budget:
            tb = B
        else:
            tb = max(1, budget // unit_bytes)
            if ndim == 2:                       # tb is the sublane dim -> keep %8
                tb = min(B, max(8, (tb // 8) * 8))
        tu = max(1, min(n_units, budget // max(tb * unit_bytes, 1)))

        grid = (pl.cdiv(B, tb), pl.cdiv(n_units, tu))
        if ndim == 2:
            x_spec = pl.BlockSpec((tb, tu * lane_q), lambda i, j: (i, j))
        else:
            x_spec = pl.BlockSpec((tb, tu) + shape[2:],
                                  lambda i, j: (i, j) + (0,) * (ndim - 2))
        s_spec = pl.BlockSpec((tb,) + (1,) * (ndim - 1),
                              lambda i, j: (i,) + (0,) * (ndim - 1))
        dims = ("parallel", "parallel")

    out = pl.pallas_call(
        _drop_path_kernel,
        out_shape=jax.ShapeDtypeStruct(shape, x.dtype),
        grid=grid,
        in_specs=[x_spec, s_spec],
        out_specs=x_spec,
        compiler_params=pltpu.CompilerParams(
            dimension_semantics=dims,
            vmem_limit_bytes=4 * budget + 4 * 1024 * 1024),
        cost_estimate=cost,
    )(x, scale)
    return out


# ----------------------------------------------------------------------------
# Validation helpers
# ----------------------------------------------------------------------------
def _check_per_sample(x, y, keep_prob):
    """Each sample must be either all-zero or exactly x / keep_prob."""
    B = x.shape[0]
    xs = np.asarray(x, dtype=np.float32).reshape(B, -1) / np.float32(keep_prob)
    yf = np.asarray(y, dtype=np.float32).reshape(B, -1)
    kept = np.max(np.abs(yf), axis=1) > 0
    for b in range(B):
        if kept[b]:
            assert np.allclose(yf[b], xs[b], rtol=1e-5, atol=1e-6), \
                f"sample {b} not scaled by 1/keep_prob"
        else:
            assert np.all(yf[b] == 0.0), f"sample {b} not fully zeroed"
    return kept


if __name__ == "__main__":
    key = jax.random.PRNGKey(0)
    kx, kx2, kx3 = jax.random.split(key, 3)
    x = jax.random.normal(kx, (2, 4, 16, 16), dtype=jnp.float32)

    # 1) eval mode / drop_prob == 0 -> exact identity (no kernel launch)
    assert bool(jnp.array_equal(pallas_drop_path(x, 0.1, training=False), x))
    assert bool(jnp.array_equal(pallas_drop_path(x, 0.0, training=True), x))

    # 2) training: per-sample mask, scale 1/keep_prob, deterministic per seed
    drop_prob = 0.3
    keep_prob = 1.0 - drop_prob
    fwd = jax.jit(functools.partial(pallas_drop_path, drop_prob=drop_prob, training=True))
    y = jax.block_until_ready(fwd(x, seed=42))
    assert y.shape == x.shape and y.dtype == x.dtype
    assert bool(jnp.all(jnp.isfinite(y)))
    _check_per_sample(x, y, keep_prob)
    y_again = jax.block_until_ready(fwd(x, seed=42))
    assert bool(jnp.array_equal(y, y_again)), "same seed must give same mask"

    # 3) non-128-aligned trailing dims, kept in original 4-D shape (no pad/slice)
    x2 = jax.random.normal(kx2, (2, 3, 5, 7), dtype=jnp.float32)
    y2 = jax.block_until_ready(pallas_drop_path(x2, 0.5, training=True, seed=7))
    _check_per_sample(x2, y2, 0.5)

    # 4) 2-D input with ragged lane dim (exercises Pallas masked partial stores)
    x3 = jax.random.normal(kx3, (4, 200), dtype=jnp.float32)
    y3 = jax.block_until_ready(pallas_drop_path(x3, 0.25, training=True, seed=3))
    _check_per_sample(x3, y3, 0.75)

    # 5) statistics: with p=0.5 over 64 seeds x 2 samples, keep-rate ~ 0.5
    stat_fn = jax.jit(functools.partial(pallas_drop_path, drop_prob=0.5, training=True))
    kept_count = 0
    for s in range(64):
        ys = stat_fn(x, seed=s)
        kept_count += int(jnp.sum(jnp.max(jnp.abs(ys.reshape(x.shape[0], -1)), axis=1) > 0))
    rate = kept_count / (64 * x.shape[0])
    assert 0.25 <= rate <= 0.75, f"keep rate {rate} far from 0.5"

    print("KERNEL_OK")
</pallas_src>

<mosaic_0001>
module attributes {stable_mosaic.version = 11 : i64} {
  func.func @_drop_path_kernel(%arg0: i32, %arg1: i32, %arg2: memref<2x4x16x16xf32, #tpu.memory_space<vmem>>, %arg3: memref<2x1x1x1xf32, #tpu.memory_space<vmem>>, %arg4: memref<2x4x16x16xf32, #tpu.memory_space<vmem>>) attributes {dimension_semantics = [#tpu.dimension_semantics<parallel>, #tpu.dimension_semantics<parallel>], iteration_bounds = array<i64: 1, 1>, scalar_prefetch = 0 : i64, scratch_operands = 0 : i64, tpu.core_type = #tpu.core_type<tc>, window_params = [{transform_indices = @transform_0, window_bounds = array<i64: 2, 4, 16, 16>}, {transform_indices = @transform_1, window_bounds = array<i64: 2, 1, 1, 1>}, {transform_indices = @transform_2, window_bounds = array<i64: 2, 4, 16, 16>}]} {
    %c0 = arith.constant 0 : index
    %c0_0 = arith.constant 0 : index
    %c0_1 = arith.constant 0 : index
    %c0_2 = arith.constant 0 : index
    %0 = vector.load %arg2[%c0, %c0_0, %c0_1, %c0_2] : memref<2x4x16x16xf32, #tpu.memory_space<vmem>>, vector<2x4x16x16xf32>
    %c0_3 = arith.constant 0 : index
    %c0_4 = arith.constant 0 : index
    %c0_5 = arith.constant 0 : index
    %c0_6 = arith.constant 0 : index
    %1 = vector.load %arg3[%c0_3, %c0_4, %c0_5, %c0_6] : memref<2x1x1x1xf32, #tpu.memory_space<vmem>>, vector<2x1x1x1xf32>
    %2 = vector.broadcast %1 : vector<2x1x1x1xf32> to vector<2x4x16x16xf32>
    %3 = arith.mulf %0, %2 : vector<2x4x16x16xf32>
    %c0_7 = arith.constant 0 : index
    %c0_8 = arith.constant 0 : index
    %c0_9 = arith.constant 0 : index
    %c0_10 = arith.constant 0 : index
    %4 = vector.load %arg4[%c0_7, %c0_8, %c0_9, %c0_10] : memref<2x4x16x16xf32, #tpu.memory_space<vmem>>, vector<2x4x16x16xf32>
    tpu.vector_store %arg4[%c0_7, %c0_8, %c0_9, %c0_10], %3 {strides = array<i32>} : memref<2x4x16x16xf32, #tpu.memory_space<vmem>>, vector<2x4x16x16xf32>,
    return
  }
  func.func @transform_0(%arg0: i32, %arg1: i32) -> (i32, i32, i32, i32) {
    %c0_i32 = arith.constant 0 : i32
    %c0_i32_0 = arith.constant 0 : i32
    %c0_i32_1 = arith.constant 0 : i32
    return %arg0, %arg1, %c0_i32, %c0_i32_0 : i32, i32, i32, i32
  }
  func.func @transform_1(%arg0: i32, %arg1: i32) -> (i32, i32, i32, i32) {
    %c0_i32 = arith.constant 0 : i32
    %c0_i32_0 = arith.constant 0 : i32
    %c0_i32_1 = arith.constant 0 : i32
    %c0_i32_2 = arith.constant 0 : i32
    return %arg0, %c0_i32, %c0_i32_0, %c0_i32_1 : i32, i32, i32, i32
  }
  func.func @transform_2(%arg0: i32, %arg1: i32) -> (i32, i32, i32, i32) {
    %c0_i32 = arith.constant 0 : i32
    %c0_i32_0 = arith.constant 0 : i32
    %c0_i32_1 = arith.constant 0 : i32
    return %arg0, %arg1, %c0_i32, %c0_i32_0 : i32, i32, i32, i32
  }
}

</mosaic_0001>

<bundles_post_ra>
// kernel: pallas_drop_path.1
= control target key start
LH: loop header
LB: loop body
LE: loop exit
PB: predicated region body
PF: predicated region fallthrough
CT: control target
= control target key end

     0   :  { %7 = vsyncpa [#allocation3], 0  ;;  %s240_s0 = inlined_call_operand.hbm [shape: f32[2,4,16,16], index: 0, kind: input, shape index: {}]   ;;  %s241_s1 = inlined_call_operand.vmem [shape: f32[2,1,1,1], index: 1, kind: input, shape index: {}]   ;;  %s242_s2 = inlined_call_operand.hbm [shape: f32[2,4,16,16], index: 2, kind: output, shape index: {}]  }
   0x1   :  { %8 = vsyncpa [#allocation4], 0  ;;  %s168_s9 = smov [#allocation2]   ;;  %s120_s13 = scalar_lea.hbm %s240_s0, 2048 }
   0x2   :  { %s14_s10 = sshll.u32 %s168_s9, 4  ;;  %p121_p0 = scmp.ne.s32.totalorder %s240_s0, %s120_s13  ;;  %s15_s10 = int_to_ptr.vmem [resolvable:$true] %s14_s10 }
   0x3   :  { %p124_p1 = scmp.lt.u32.totalorder %s120_s13, %s240_s0 }
   0x5   :  { %p126_p2 = pnand %p124_p1, %p121_p0 }
   0x7   :  { %129 = shalt.err (!%p126_p2)
}
   0x8   :  { %s130_s18 = scalar_lea.vmem %s15_s10, 2048  ;;  %p135_p4 = scmp.lt.s32.totalorder %s15_s10, %s15_s10 }
   0x9   :  { %p131_p3 = scmp.ne.s32.totalorder %s15_s10, %s130_s18  ;;  %p136_p5 = scmp.lt.s32.totalorder %s130_s18, %s130_s18 }
   0xb   :  { %p137_p6 = por %p136_p5, %p135_p4 }
   0xd   :  { %p138_p7 = pnand %p137_p6, %p131_p3 }
   0xf   :  { %141 = shalt.err (!%p138_p7)
}
  0x10   :  { %s169_s19 = smov 128   ;;  %s170_s20 = smov 8  }
  0x11   :  { %20 = dma.hbm_to_vmem [thread:$0]  %s240_s0, 2048, %s15_s10, [#allocation3], %s169_s19, %s169_s19, %s170_s20  }
  0x12   :  { %164 = dma.done.wait [#allocation3], 2048  }
  0x13   :  { %165 = vsyncadd [#allocation3], 4294965248  ;;  %v171_v0 = vmov 0   ;;  %v112_v1 = vld [vmem:[%s241_s1] ss:$0 sm:$0xff]  ;;  %v27_v4 = vld [vmem:[#allocation2 + $0x8] sm:$0xff] }
  0x14   :  { %119 = vset.pattern.permute.xlu0 %v171_v0  ;;  %v113_v2 = vld [vmem:[%s241_s1 + $0x1] ss:$0 sm:$0xff]  ;;  %v28_v5 = vld [vmem:[#allocation2 + $0x10] sm:$0xff]  ;;  %v29_v6 = vld [vmem:[#allocation2 + $0x18] sm:$0xff]  ;;  %vm78_vm0 = vcmask 130048   ;;  %s172_s0 = smov [#allocation5]  }
  0x15   :  { %55 = vperm.xlu0 %119, %v112_v1   ;;  %v26_v3 = vld [vmem:[#allocation2] sm:$0xff]  ;;  %v31_v8 = vld [vmem:[#allocation2 + $0x28] sm:$0xff]  ;;  %v32_v9 = vld [vmem:[#allocation2 + $0x30] sm:$0xff]  ;;  %s100_s1 = sshll.u32 %s172_s0, 4  ;;  %s101_s1 = int_to_ptr.vmem [resolvable:$true] %s100_s1 }
  0x16   :  { %v30_v7 = vld [vmem:[#allocation2 + $0x20] sm:$0xff]  ;;  %v33_v10 = vld [vmem:[#allocation2 + $0x38] sm:$0xff]  ;;  %v35_v17 = vld [vmem:[#allocation2 + $0x48] sm:$0xff]  ;;  %s142_s27 = scalar_lea.vmem %s101_s1, 2048  ;;  %p147_p9 = scmp.lt.s32.totalorder %s101_s1, %s101_s1 }
  0x17   :  { %v34_v16 = vld [vmem:[#allocation2 + $0x40] sm:$0xff]  ;;  %v36_v22 = vld [vmem:[#allocation2 + $0x50] sm:$0xff]  ;;  %v37_v23 = vld [vmem:[#allocation2 + $0x58] sm:$0xff]  ;;  %p143_p8 = scmp.ne.s32.totalorder %s101_s1, %s142_s27  ;;  %p148_p10 = scmp.lt.s32.totalorder %s142_s27, %s142_s27 }
  0x18   :  { %v38_v24 = vld [vmem:[#allocation2 + $0x60] sm:$0xff]  ;;  %v39_v25 = vld [vmem:[#allocation2 + $0x68] sm:$0xff]  ;;  %v40_v26 = vld [vmem:[#allocation2 + $0x70] sm:$0xff] }
  0x19   :  { %59 = vperm.xlu0 %119, %v113_v2   ;;  %v41_v27 = vld [vmem:[#allocation2 + $0x78] sm:$0xff]  ;;  %p149_p11 = por %p148_p10, %p147_p9 }
  0x1b   :  { %p150_p12 = pnand %p149_p11, %p143_p8 }
  0x94   :  { %v56_v11 = vpop.permute.xlu0 %55 }
  0x95   :  { %v62_v12 = vmul.f32 %v56_v11, %v26_v3  ;;  %v63_v13 = vmul.f32 %v56_v11, %v27_v4  ;;  %v64_v14 = vmul.f32 %v56_v11, %v28_v5  ;;  %v65_v15 = vmul.f32 %v56_v11, %v29_v6 }
  0x96   :  { %v66_v18 = vmul.f32 %v56_v11, %v30_v7  ;;  %v67_v19 = vmul.f32 %v56_v11, %v31_v8  ;;  %v68_v20 = vmul.f32 %v56_v11, %v32_v9  ;;  %v69_v21 = vmul.f32 %v56_v11, %v33_v10 }
  0x97   :  { %79 = vst.msk [vmem:[#allocation5] sm:$0xff] %vm78_vm0, %v62_v12  ;;  %80 = vst.msk [vmem:[#allocation5 + $0x8] sm:$0xff] %vm78_vm0, %v63_v13 }
  0x98   :  { %81 = vst.msk [vmem:[#allocation5 + $0x10] sm:$0xff] %vm78_vm0, %v64_v14  ;;  %82 = vst.msk [vmem:[#allocation5 + $0x18] sm:$0xff] %vm78_vm0, %v65_v15  ;;  %v60_v28 = vpop.permute.xlu0 %59 }
  0x99   :  { %83 = vst.msk [vmem:[#allocation5 + $0x20] sm:$0xff] %vm78_vm0, %v66_v18  ;;  %84 = vst.msk [vmem:[#allocation5 + $0x28] sm:$0xff] %vm78_vm0, %v67_v19  ;;  %v70_v29 = vmul.f32 %v60_v28, %v34_v16  ;;  %v71_v30 = vmul.f32 %v60_v28, %v35_v17  ;;  %v72_v31 = vmul.f32 %v60_v28, %v36_v22 }
  0x9a   :  { %85 = vst.msk [vmem:[#allocation5 + $0x30] sm:$0xff] %vm78_vm0, %v68_v20  ;;  %86 = vst.msk [vmem:[#allocation5 + $0x38] sm:$0xff] %vm78_vm0, %v69_v21  ;;  %v73_v32 = vmul.f32 %v60_v28, %v37_v23  ;;  %v74_v33 = vmul.f32 %v60_v28, %v38_v24  ;;  %v75_v34 = vmul.f32 %v60_v28, %v39_v25 }
  0x9b   :  { %v76_v35 = vmul.f32 %v60_v28, %v40_v26  ;;  %v77_v36 = vmul.f32 %v60_v28, %v41_v27  ;;  %87 = vst.msk [vmem:[#allocation5 + $0x40] sm:$0xff] %vm78_vm0, %v70_v29  ;;  %88 = vst.msk [vmem:[#allocation5 + $0x48] sm:$0xff] %vm78_vm0, %v71_v30 }
  0x9c   :  { %89 = vst.msk [vmem:[#allocation5 + $0x50] sm:$0xff] %vm78_vm0, %v72_v31  ;;  %90 = vst.msk [vmem:[#allocation5 + $0x58] sm:$0xff] %vm78_vm0, %v73_v32 }
  0x9d   :  { %91 = vst.msk [vmem:[#allocation5 + $0x60] sm:$0xff] %vm78_vm0, %v74_v33  ;;  %92 = vst.msk [vmem:[#allocation5 + $0x68] sm:$0xff] %vm78_vm0, %v75_v34 }
  0x9e   :  { %93 = vst.msk [vmem:[#allocation5 + $0x70] sm:$0xff] %vm78_vm0, %v76_v35  ;;  %94 = vst.msk [vmem:[#allocation5 + $0x78] sm:$0xff] %vm78_vm0, %v77_v36 }
  0x9f   :  { %153 = shalt.err (!%p150_p12)
}
  0xa0   :  { %s154_s30 = scalar_lea.hbm %s242_s2, 2048 }
  0xa1   :  { %p155_p13 = scmp.ne.s32.totalorder %s242_s2, %s154_s30  ;;  %p158_p0 = scmp.lt.u32.totalorder %s154_s30, %s242_s2 }
  0xa3   :  { %p160_p1 = pnand %p158_p0, %p155_p13 }
  0xa5   :  { %163 = shalt.err (!%p160_p1)
}
  0xa6   :  { %106 = dma.vmem_to_hbm [thread:$0]  %s101_s1, 2048, %s242_s2, [#allocation4], %s169_s19, %s169_s19, %s170_s20  }
  0xa7   :  { %166 = dma.done.wait [#allocation4], 2048  }
  0xa8   :  { %167 = vsyncadd [#allocation4], 4294965248 }
  0xa9   :  { %110 = vsyncpa [#allocation3], 1 }
  0xaa   :  { %111 = vsyncpa [#allocation4], 1 }

</bundles_post_ra>
